<compile_context>
chip_gen: v7x
topology: tpu7x:2x2x1
jax: 0.10.0
libtpu: 0.0.40
codegen_flags: <defaults>
</compile_context>

<pallas_src>
import jax
import jax.numpy as jnp
from jax.experimental import pallas as pl
from jax.experimental.pallas import tpu as pltpu

# ----- synthetic "env" configuration (the PyTorch module reads these from env) -----
SEQUENCE_LENGTH = 8
EMBEDDING_DIM = 32
HIDDEN = 256
OUT = 1
OUT_PAD = 128                                   # lane-dense output slab width
D_HALF = SEQUENCE_LENGTH * EMBEDDING_DIM        # 256 (per input half)
D_IN = 2 * D_HALF                               # 512


def _round_up(n, m):
    return ((n + m - 1) // m) * m


def mlp_kernel(x_ref, y_ref, w1x_ref, w1y_ref, b1_ref, w2_ref, b2_ref, o_ref):
    # fc1 on the MXU.  torch.cat(x, y, -1) is folded into split weights:
    #   cat(x, y) @ W1 == x @ W1x + y @ W1y   (no concatenated activation in HBM)
    h = jnp.dot(x_ref[...], w1x_ref[...], preferred_element_type=jnp.float32)
    h = h + jnp.dot(y_ref[...], w1y_ref[...], preferred_element_type=jnp.float32)
    h = h + b1_ref[...]                 # bias add in f32 (post-accumulation)
    h = jnp.maximum(h, 0.0)             # ReLU on the VPU
    # fc2: out_features == 1, so a (tm,256)@(256,1) MXU matmul would be a
    # degenerate single-column drain.  Do it as VPU multiply + XLU lane reduce.
    o = jnp.sum(h * w2_ref[...], axis=-1, keepdims=True) + b2_ref[0]
    # Broadcast the per-row scalar across 128 lanes -> unmasked, lane-dense
    # stores.  The wrapper slices column 0.
    o_ref[...] = jnp.broadcast_to(o, o_ref.shape).astype(o_ref.dtype)


def mlp_forward(x, y, w1, b1, w2, b2, *, block_m=256, matmul_dtype=jnp.float32):
    """x, y: (B, S, E) float32.  w1: (2*S*E, H), b1: (1, H), w2: (H, 1), b2: (1, 1)
    (weights stored as (in, out), i.e. transposed w.r.t. nn.Linear; same math).
    Returns (B, 1) float32 == relu(cat(x, y, -1).view(B, -1) @ w1 + b1) @ w2 + b2."""
    B, S, E = x.shape
    d_half = S * E
    H = w1.shape[1]

    # Contiguous reshapes only (no data movement).
    x_flat = x.reshape(B, d_half)
    y_flat = y.reshape(B, d_half)

    # Split W1 rows to match the cat(x, y, dim=-1).view(B, -1) feature order:
    # flattened feature s*2E + e comes from x, s*2E + E + e comes from y.
    w1r = w1.reshape(S, 2 * E, H)
    w1x = w1r[:, :E, :].reshape(d_half, H).astype(matmul_dtype)
    w1y = w1r[:, E:, :].reshape(d_half, H).astype(matmul_dtype)

    b1_row = b1.reshape(1, H).astype(jnp.float32)
    w2_row = w2.reshape(1, H).astype(jnp.float32)   # fc2 weight as a lane row
    b2_s = b2.reshape(1).astype(jnp.float32)        # scalar -> SMEM

    # Batch tiling: pick the largest M tile <= block_m (256 keeps the v6e/v7x
    # MXU full; it's also a multiple of 128 for v5e).  Pad B so every block is
    # full -> no masked partial tiles.  Weights stay resident across the grid.
    tm = min(block_m, _round_up(B, 16))
    B_pad = _round_up(B, tm)
    if B_pad != B:
        pad = ((0, B_pad - B), (0, 0))
        x_flat = jnp.pad(x_flat, pad)
        y_flat = jnp.pad(y_flat, pad)
    x_flat = x_flat.astype(matmul_dtype)
    y_flat = y_flat.astype(matmul_dtype)

    grid = (B_pad // tm,)
    itemsize = jnp.dtype(matmul_dtype).itemsize
    cost = pl.CostEstimate(
        flops=2 * B_pad * (2 * d_half) * H + 2 * B_pad * H,
        transcendentals=0,
        bytes_accessed=(2 * B_pad * d_half * itemsize          # activations
                        + 2 * d_half * H * itemsize            # split W1
                        + (2 * H + 1) * 4                      # b1, w2 row, b2
                        + B_pad * OUT_PAD * 4),                # output slab
    )

    out_padded = pl.pallas_call(
        mlp_kernel,
        out_shape=jax.ShapeDtypeStruct((B_pad, OUT_PAD), jnp.float32),
        grid=grid,
        in_specs=[
            pl.BlockSpec((tm, d_half), lambda i: (i, 0)),        # x tile (pipelined)
            pl.BlockSpec((tm, d_half), lambda i: (i, 0)),        # y tile (pipelined)
            pl.BlockSpec((d_half, H), lambda i: (0, 0)),         # W1x (resident)
            pl.BlockSpec((d_half, H), lambda i: (0, 0)),         # W1y (resident)
            pl.BlockSpec((1, H), lambda i: (0, 0)),              # b1 (resident)
            pl.BlockSpec((1, H), lambda i: (0, 0)),              # w2 row (resident)
            pl.BlockSpec(memory_space=pltpu.MemorySpace.SMEM),   # b2 scalar
        ],
        out_specs=pl.BlockSpec((tm, OUT_PAD), lambda i: (i, 0)),
        compiler_params=pltpu.CompilerParams(
            dimension_semantics=("parallel",),
        ),
        cost_estimate=cost,
    )(x_flat, y_flat, w1x, w1y, b1_row, w2_row, b2_s)

    return out_padded[:B, :OUT]


def init_params(key):
    """Deterministic init matching nn.Linear shapes (uniform +/- 1/sqrt(fan_in))."""
    k1, k2, k3, k4 = jax.random.split(key, 4)
    bound1 = 1.0 / jnp.sqrt(D_IN)
    bound2 = 1.0 / jnp.sqrt(HIDDEN)
    w1 = jax.random.uniform(k1, (D_IN, HIDDEN), jnp.float32, -bound1, bound1)
    b1 = jax.random.uniform(k2, (1, HIDDEN), jnp.float32, -bound1, bound1)
    w2 = jax.random.uniform(k3, (HIDDEN, OUT), jnp.float32, -bound2, bound2)
    b2 = jax.random.uniform(k4, (1, OUT), jnp.float32, -bound2, bound2)
    return w1, b1, w2, b2


def _reference(x, y, w1, b1, w2, b2):
    inp = jnp.concatenate([x, y], axis=-1).reshape(x.shape[0], -1)
    h = jnp.maximum(jnp.dot(inp, w1, precision=jax.lax.Precision.HIGHEST) + b1, 0.0)
    return jnp.dot(h, w2, precision=jax.lax.Precision.HIGHEST) + b2


if __name__ == "__main__":
    key = jax.random.PRNGKey(0)
    kx, ky, kp = jax.random.split(key, 3)

    B = 2
    x = jax.random.normal(kx, (B, SEQUENCE_LENGTH, EMBEDDING_DIM), jnp.float32)
    y = jax.random.normal(ky, (B, SEQUENCE_LENGTH, EMBEDDING_DIM), jnp.float32)
    w1, b1, w2, b2 = init_params(kp)

    # --- f32 path, tiny batch (single grid step) ---
    out = jax.block_until_ready(mlp_forward(x, y, w1, b1, w2, b2))
    ref = _reference(x, y, w1, b1, w2, b2)
    assert out.shape == (B, OUT)
    assert jnp.allclose(out, ref, atol=1e-4, rtol=1e-4)

    # --- f32 path, bigger batch: exercises the pipelined batch grid + padding ---
    B2 = 40
    kx2, ky2 = jax.random.split(jax.random.PRNGKey(1))
    x2 = jax.random.normal(kx2, (B2, SEQUENCE_LENGTH, EMBEDDING_DIM), jnp.float32)
    y2 = jax.random.normal(ky2, (B2, SEQUENCE_LENGTH, EMBEDDING_DIM), jnp.float32)
    out2 = jax.block_until_ready(mlp_forward(x2, y2, w1, b1, w2, b2, block_m=16))
    ref2 = _reference(x2, y2, w1, b1, w2, b2)
    assert out2.shape == (B2, OUT)
    assert jnp.allclose(out2, ref2, atol=1e-4, rtol=1e-4)

    # --- bf16 fc1 path (v6e/v7x MXU), f32 accumulation -> looser tolerance ---
    out_bf16 = jax.block_until_ready(
        mlp_forward(x2, y2, w1, b1, w2, b2, block_m=16, matmul_dtype=jnp.bfloat16))
    assert jnp.allclose(out_bf16, ref2, atol=5e-2, rtol=5e-2)

    print("KERNEL_OK")
</pallas_src>

<mosaic_0001>
module attributes {stable_mosaic.version = 11 : i64} {
  func.func @mlp_kernel(%arg0: i32, %arg1: memref<16x256xf32, #tpu.memory_space<vmem>>, %arg2: memref<16x256xf32, #tpu.memory_space<vmem>>, %arg3: memref<256x256xf32, #tpu.memory_space<vmem>>, %arg4: memref<256x256xf32, #tpu.memory_space<vmem>>, %arg5: memref<1x256xf32, #tpu.memory_space<vmem>>, %arg6: memref<1x256xf32, #tpu.memory_space<vmem>>, %arg7: memref<1xf32, #tpu.memory_space<smem>>, %arg8: memref<16x128xf32, #tpu.memory_space<vmem>>) attributes {dimension_semantics = [#tpu.dimension_semantics<parallel>], iteration_bounds = array<i64: 1>, scalar_prefetch = 0 : i64, scratch_operands = 0 : i64, tpu.core_type = #tpu.core_type<tc>, window_params = [{transform_indices = @transform_0, window_bounds = array<i64: 16, 256>}, {transform_indices = @transform_1, window_bounds = array<i64: 16, 256>}, {pipeline_mode = #tpu.pipeline_mode<synchronous>, transform_indices = @transform_2, window_bounds = array<i64: 256, 256>}, {pipeline_mode = #tpu.pipeline_mode<synchronous>, transform_indices = @transform_3, window_bounds = array<i64: 256, 256>}, {pipeline_mode = #tpu.pipeline_mode<synchronous>, transform_indices = @transform_4, window_bounds = array<i64: 1, 256>}, {pipeline_mode = #tpu.pipeline_mode<synchronous>, transform_indices = @transform_5, window_bounds = array<i64: 1, 256>}, {transform_indices = @transform_6, window_bounds = array<i64: 1>}, {transform_indices = @transform_7, window_bounds = array<i64: 16, 128>}]} {
    %c0 = arith.constant 0 : index
    %c0_0 = arith.constant 0 : index
    %0 = vector.load %arg1[%c0, %c0_0] : memref<16x256xf32, #tpu.memory_space<vmem>>, vector<16x256xf32>
    %c0_1 = arith.constant 0 : index
    %c0_2 = arith.constant 0 : index
    %1 = vector.load %arg3[%c0_1, %c0_2] : memref<256x256xf32, #tpu.memory_space<vmem>>, vector<256x256xf32>
    %cst = arith.constant dense<0.000000e+00> : vector<16x256xf32>
    %2 = tpu.matmul %0, %1, %cst {dimension_numbers = #tpu.dot_dimension_numbers<[1], [0], [0], [1], [0, 0, 1, 1], [], []>} : vector<16x256xf32>, vector<256x256xf32>, vector<16x256xf32> -> vector<16x256xf32>
    %c0_3 = arith.constant 0 : index
    %c0_4 = arith.constant 0 : index
    %3 = vector.load %arg2[%c0_3, %c0_4] : memref<16x256xf32, #tpu.memory_space<vmem>>, vector<16x256xf32>
    %c0_5 = arith.constant 0 : index
    %c0_6 = arith.constant 0 : index
    %4 = vector.load %arg4[%c0_5, %c0_6] : memref<256x256xf32, #tpu.memory_space<vmem>>, vector<256x256xf32>
    %cst_7 = arith.constant dense<0.000000e+00> : vector<16x256xf32>
    %5 = tpu.matmul %3, %4, %cst_7 {dimension_numbers = #tpu.dot_dimension_numbers<[1], [0], [0], [1], [0, 0, 1, 1], [], []>} : vector<16x256xf32>, vector<256x256xf32>, vector<16x256xf32> -> vector<16x256xf32>
    %6 = arith.addf %2, %5 : vector<16x256xf32>
    %c0_8 = arith.constant 0 : index
    %c0_9 = arith.constant 0 : index
    %7 = vector.load %arg5[%c0_8, %c0_9] : memref<1x256xf32, #tpu.memory_space<vmem>>, vector<1x256xf32>
    %8 = vector.broadcast %7 : vector<1x256xf32> to vector<16x256xf32>
    %9 = arith.addf %6, %8 : vector<16x256xf32>
    %cst_10 = arith.constant 0.000000e+00 : f32
    %10 = vector.broadcast %cst_10 : f32 to vector<16x256xf32>
    %11 = arith.maximumf %9, %10 : vector<16x256xf32>
    %c0_11 = arith.constant 0 : index
    %c0_12 = arith.constant 0 : index
    %12 = vector.load %arg6[%c0_11, %c0_12] : memref<1x256xf32, #tpu.memory_space<vmem>>, vector<1x256xf32>
    %13 = vector.broadcast %12 : vector<1x256xf32> to vector<16x256xf32>
    %14 = arith.mulf %11, %13 : vector<16x256xf32>
    %cst_13 = arith.constant dense<0.000000e+00> : vector<16xf32>
    %15 = vector.multi_reduction <add>, %14, %cst_13 [1] : vector<16x256xf32> to vector<16xf32>
    %16 = vector.shape_cast %15 : vector<16xf32> to vector<16x1xf32>
    %c0_14 = arith.constant 0 : index
    %17 = memref.load %arg7[%c0_14] : memref<1xf32, #tpu.memory_space<smem>>
    %18 = vector.broadcast %17 : f32 to vector<16x1xf32>
    %19 = arith.addf %16, %18 : vector<16x1xf32>
    %20 = vector.shape_cast %19 : vector<16x1xf32> to vector<16x1xf32>
    %21 = vector.broadcast %20 : vector<16x1xf32> to vector<16x128xf32>
    %c0_15 = arith.constant 0 : index
    %c0_16 = arith.constant 0 : index
    %22 = vector.load %arg8[%c0_15, %c0_16] : memref<16x128xf32, #tpu.memory_space<vmem>>, vector<16x128xf32>
    tpu.vector_store %arg8[%c0_15, %c0_16], %21 {strides = array<i32>} : memref<16x128xf32, #tpu.memory_space<vmem>>, vector<16x128xf32>,
    return
  }
  func.func @transform_0(%arg0: i32) -> (i32, i32) {
    %c0_i32 = arith.constant 0 : i32
    %c0_i32_0 = arith.constant 0 : i32
    return %arg0, %c0_i32 : i32, i32
  }
  func.func @transform_1(%arg0: i32) -> (i32, i32) {
    %c0_i32 = arith.constant 0 : i32
    %c0_i32_0 = arith.constant 0 : i32
    return %arg0, %c0_i32 : i32, i32
  }
  func.func @transform_2(%arg0: i32) -> (i32, i32) {
    %c0_i32 = arith.constant 0 : i32
    %c0_i32_0 = arith.constant 0 : i32
    %c0_i32_1 = arith.constant 0 : i32
    return %c0_i32, %c0_i32_0 : i32, i32
  }
  func.func @transform_3(%arg0: i32) -> (i32, i32) {
    %c0_i32 = arith.constant 0 : i32
    %c0_i32_0 = arith.constant 0 : i32
    %c0_i32_1 = arith.constant 0 : i32
    return %c0_i32, %c0_i32_0 : i32, i32
  }
  func.func @transform_4(%arg0: i32) -> (i32, i32) {
    %c0_i32 = arith.constant 0 : i32
    %c0_i32_0 = arith.constant 0 : i32
    %c0_i32_1 = arith.constant 0 : i32
    return %c0_i32, %c0_i32_0 : i32, i32
  }
  func.func @transform_5(%arg0: i32) -> (i32, i32) {
    %c0_i32 = arith.constant 0 : i32
    %c0_i32_0 = arith.constant 0 : i32
    %c0_i32_1 = arith.constant 0 : i32
    return %c0_i32, %c0_i32_0 : i32, i32
  }
  func.func @transform_6(%arg0: i32) -> i32 {
    %c0_i32 = arith.constant 0 : i32
    %c0_i32_0 = arith.constant 0 : i32
    return %c0_i32 : i32
  }
  func.func @transform_7(%arg0: i32) -> (i32, i32) {
    %c0_i32 = arith.constant 0 : i32
    %c0_i32_0 = arith.constant 0 : i32
    return %arg0, %c0_i32 : i32, i32
  }
}

</mosaic_0001>

<bundles_post_ra>
// kernel: tpu_custom_call.1
= control target key start
LH: loop header
LB: loop body
LE: loop exit
PB: predicated region body
PF: predicated region fallthrough
CT: control target
= control target key end

     0   :  { %13 = vsyncpa [#allocation4], 0  ;;  %s843_s0 = inlined_call_operand.hbm [shape: f32[16,256], index: 0, kind: input, shape index: {}]   ;;  %s844_s1 = inlined_call_operand.hbm [shape: f32[16,256], index: 1, kind: input, shape index: {}]   ;;  %s845_s2 = inlined_call_operand.hbm [shape: f32[256,256], index: 2, kind: input, shape index: {}]   ;;  %s846_s3 = inlined_call_operand.hbm [shape: f32[256,256], index: 3, kind: input, shape index: {}]   ;;  %s847_s4 = inlined_call_operand.vmem [shape: f32[1,256], index: 4, kind: input, shape index: {}]   ;;  %s848_s5 = inlined_call_operand.vmem [shape: f32[1,256], index: 5, kind: input, shape index: {}]   ;;  %s849_s6 = inlined_call_operand.<no memory space> [shape: f32[1], index: 6, kind: input, shape index: {}]   ;;  %s850_s7 = inlined_call_operand.hbm [shape: f32[16,128], index: 7, kind: output, shape index: {}]  }
   0x1   :  { %14 = vsyncpa [#allocation7], 0 }
   0x2   :  { %15 = vsyncpa [#allocation10], 0 }
   0x3   :  { %16 = vsyncpa [#allocation5], 0  ;;  %s699_s24 = smov [#allocation6]   ;;  %s700_s26 = smov [#allocation3]  }
   0x4   :  { %s34_s25 = sshll.u32 %s699_s24, 4  ;;  %s22_s27 = sshll.u32 %s700_s26, 4  ;;  %s35_s25 = int_to_ptr.vmem [resolvable:$true] %s34_s25  ;;  %s748_s27 = int_to_ptr.vmem [resolvable:$true] %s22_s27 }
   0x5   :  { %s581_s30 = scalar_lea.hbm %s844_s1, 512 }
   0x6   :  { %p582_p0 = scmp.ne.s32.totalorder %s844_s1, %s581_s30  ;;  %p585_p1 = scmp.lt.u32.totalorder %s581_s30, %s844_s1 }
   0x8   :  { %p587_p2 = pnand %p585_p1, %p582_p0 }
   0xa   :  { %590 = shalt.err (!%p587_p2)
}
   0xb   :  { %s591_s12 = scalar_lea.vmem %s35_s25, 512  ;;  %p596_p4 = scmp.lt.s32.totalorder %s35_s25, %s35_s25 }
   0xc   :  { %p592_p3 = scmp.ne.s32.totalorder %s35_s25, %s591_s12  ;;  %p597_p5 = scmp.lt.s32.totalorder %s591_s12, %s591_s12 }
   0xe   :  { %p598_p6 = por %p597_p5, %p596_p4 }
  0x10   :  { %p599_p7 = pnand %p598_p6, %p592_p3 }
  0x12   :  { %602 = shalt.err (!%p599_p7)
}
  0x13   :  { %s701_s13 = smov 256   ;;  %s702_s14 = smov 16  }
  0x14   :  { %40 = dma.hbm_to_vmem [thread:$0]  %s844_s1, 512, %s35_s25, [#allocation7], %s701_s13, %s701_s13, %s702_s14  }
  0x15   :  { %s603_s19 = scalar_lea.hbm %s843_s0, 512 }
  0x16   :  { %p604_p8 = scmp.ne.s32.totalorder %s843_s0, %s603_s19  ;;  %p607_p9 = scmp.lt.u32.totalorder %s603_s19, %s843_s0 }
  0x18   :  { %p609_p10 = pnand %p607_p9, %p604_p8 }
  0x1a   :  { %612 = shalt.err (!%p609_p10)
}
  0x1b   :  { %s613_s24 = scalar_lea.vmem %s748_s27, 512  ;;  %p618_p12 = scmp.lt.s32.totalorder %s748_s27, %s748_s27 }
  0x1c   :  { %p614_p11 = scmp.ne.s32.totalorder %s748_s27, %s613_s24  ;;  %p619_p13 = scmp.lt.s32.totalorder %s613_s24, %s613_s24 }
  0x1e   :  { %p620_p0 = por %p619_p13, %p618_p12 }
  0x20   :  { %p621_p1 = pnand %p620_p0, %p614_p11 }
  0x22   :  { %624 = shalt.err (!%p621_p1)
}
  0x23   :  { %28 = dma.hbm_to_vmem [thread:$0]  %s843_s0, 512, %s748_s27, [#allocation4], %s701_s13, %s701_s13, %s702_s14  }
  0x24   :  { %s703_s26 = smov [#allocation8]   ;;  %s704_s29 = smov [#allocation9]  }
  0x25   :  { %s46_s28 = sshll.u32 %s703_s26, 4  ;;  %s58_s30 = sshll.u32 %s704_s29, 4  ;;  %s47_s28 = int_to_ptr.vmem [resolvable:$true] %s46_s28  ;;  %s785_s30 = int_to_ptr.vmem [resolvable:$true] %s58_s30 }
  0x26   :  { %s625_s10 = scalar_lea.hbm %s845_s2, 8192 }
  0x27   :  { %p626_p2 = scmp.ne.s32.totalorder %s845_s2, %s625_s10  ;;  %p629_p3 = scmp.lt.u32.totalorder %s625_s10, %s845_s2 }
  0x29   :  { %p631_p4 = pnand %p629_p3, %p626_p2 }
  0x2b   :  { %634 = shalt.err (!%p631_p4)
}
  0x2c   :  { %s635_s0 = scalar_lea.vmem %s47_s28, 8192  ;;  %p640_p6 = scmp.lt.s32.totalorder %s47_s28, %s47_s28 }
  0x2d   :  { %p636_p5 = scmp.ne.s32.totalorder %s47_s28, %s635_s0  ;;  %p641_p7 = scmp.lt.s32.totalorder %s635_s0, %s635_s0 }
  0x2f   :  { %p642_p8 = por %p641_p7, %p640_p6 }
  0x31   :  { %p643_p9 = pnand %p642_p8, %p636_p5 }
  0x33   :  { %646 = shalt.err (!%p643_p9)
}
  0x34   :  { %52 = dma.hbm_to_vmem [thread:$0]  %s845_s2, 8192, %s47_s28, [#allocation7], %s701_s13, %s701_s13, %s702_s14  }
  0x35   :  { %s647_s20 = scalar_lea.hbm %s846_s3, 8192 }
  0x36   :  { %p648_p10 = scmp.ne.s32.totalorder %s846_s3, %s647_s20  ;;  %p651_p11 = scmp.lt.u32.totalorder %s647_s20, %s846_s3 }
  0x38   :  { %p653_p12 = pnand %p651_p11, %p648_p10 }
  0x3a   :  { %656 = shalt.err (!%p653_p12)
}
  0x3b   :  { %s657_s1 = scalar_lea.vmem %s785_s30, 8192  ;;  %p662_p0 = scmp.lt.s32.totalorder %s785_s30, %s785_s30 }
  0x3c   :  { %p658_p13 = scmp.ne.s32.totalorder %s785_s30, %s657_s1  ;;  %p663_p1 = scmp.lt.s32.totalorder %s657_s1, %s657_s1 }
  0x3e   :  { %p664_p2 = por %p663_p1, %p662_p0 }
  0x40   :  { %p665_p3 = pnand %p664_p2, %p658_p13 }
  0x42   :  { %668 = shalt.err (!%p665_p3)
}
  0x43   :  { %64 = dma.hbm_to_vmem [thread:$0]  %s846_s3, 8192, %s785_s30, [#allocation10], %s701_s13, %s701_s13, %s702_s14  }
  0x44   :  { %691 = dma.done.wait [#allocation4], 512  }
  0x45   :  { %692 = vsyncadd [#allocation4], 4294966784 }
  0x46   :  { %693 = dma.done.wait [#allocation7], 8704  }
  0x47   :  { %694 = vsyncadd [#allocation7], 4294958592 }
  0x48   :  { %695 = dma.done.wait [#allocation10], 8192  }
  0x49   :  { %696 = vsyncadd [#allocation10], 4294959104  ;;  %v156_v0 = vld [vmem:[#allocation9 + $0x8] sm:$0xff]  ;;  %v158_v1 = vld [vmem:[#allocation9 + $0x18] sm:$0xff]  ;;  %s705_s28 = smov [#allocation11]  }
  0x4a   :  { %v88_v2 = vld [vmem:[#allocation8 + $0x8] sm:$0xff]  ;;  %v440_v3 = vpack.c.bf16 %v158_v1, %v156_v0  ;;  %v90_v4 = vld [vmem:[#allocation8 + $0x18] sm:$0xff]  ;;  %v155_v5 = vld [vmem:[#allocation9] sm:$0xff]  ;;  %s426_s29 = sshll.u32 %s705_s28, 4  ;;  %s427_s29 = int_to_ptr.vmem [resolvable:$true] %s426_s29 }
  0x4b   :  { %v157_v6 = vld [vmem:[#allocation9 + $0x10] sm:$0xff]  ;;  %v504_v7 = vpack.c.bf16 %v90_v4, %v88_v2  ;;  %v87_v9 = vld [vmem:[#allocation8] sm:$0xff]  ;;  %v160_v11 = vld [vmem:[#allocation9 + $0x28] sm:$0xff]  ;;  %s669_s30 = scalar_lea.vmem %s427_s29, 256  ;;  %p674_p5 = scmp.lt.s32.totalorder %s427_s29, %s427_s29 }
  0x4c   :  { %v442_v8 = vpack.c.bf16 %v157_v6, %v155_v5  ;;  %v89_v10 = vld [vmem:[#allocation8 + $0x10] sm:$0xff]  ;;  %441 = vmatprep.subr.bf16.mxu1 %v440_v3  ;;  %v162_v13 = vld [vmem:[#allocation9 + $0x38] sm:$0xff]  ;;  %v92_v14 = vld [vmem:[#allocation8 + $0x28] sm:$0xff]  ;;  %p670_p4 = scmp.ne.s32.totalorder %s427_s29, %s669_s30  ;;  %p675_p6 = scmp.lt.s32.totalorder %s669_s30, %s669_s30 }
  0x4d   :  { %v506_v12 = vpack.c.bf16 %v89_v10, %v87_v9  ;;  %v94_v15 = vld [vmem:[#allocation8 + $0x38] sm:$0xff]  ;;  %505 = vmatprep.subr.bf16.mxu0 %v504_v7  ;;  %v444_v16 = vpack.c.bf16 %v162_v13, %v160_v11  ;;  %v159_v18 = vld [vmem:[#allocation9 + $0x20] sm:$0xff]  ;;  %v161_v19 = vld [vmem:[#allocation9 + $0x30] sm:$0xff] }
  0x4e   :  { %443 = vmatpush1.bf16.msra.mxu1 %v442_v8  ;;  %v508_v17 = vpack.c.bf16 %v94_v15, %v92_v14  ;;  %v91_v20 = vld [vmem:[#allocation8 + $0x20] sm:$0xff]  ;;  %v446_v21 = vpack.c.bf16 %v161_v19, %v159_v18  ;;  %v93_v22 = vld [vmem:[#allocation8 + $0x30] sm:$0xff]  ;;  %v164_v23 = vld [vmem:[#allocation9 + $0x48] sm:$0xff]  ;;  %p676_p7 = por %p675_p6, %p674_p5 }
  0x4f   :  { %507 = vmatpush1.bf16.msra.mxu0 %v506_v12  ;;  %v166_v24 = vld [vmem:[#allocation9 + $0x58] sm:$0xff]  ;;  %445 = vmatprep.subr.bf16.mxu1 %v444_v16  ;;  %v510_v25 = vpack.c.bf16 %v93_v22, %v91_v20  ;;  %v96_v27 = vld [vmem:[#allocation8 + $0x48] sm:$0xff]  ;;  %v163_v29 = vld [vmem:[#allocation9 + $0x40] sm:$0xff] }
  0x50   :  { %509 = vmatprep.subr.bf16.mxu0 %v508_v17  ;;  %v448_v26 = vpack.c.bf16 %v166_v24, %v164_v23  ;;  %v98_v28 = vld [vmem:[#allocation8 + $0x58] sm:$0xff]  ;;  %v165_v31 = vld [vmem:[#allocation9 + $0x50] sm:$0xff]  ;;  %v95_v32 = vld [vmem:[#allocation8 + $0x40] sm:$0xff]  ;;  %p677_p8 = pnand %p676_p7, %p670_p4 }
  0x51   :  { %v512_v30 = vpack.c.bf16 %v98_v28, %v96_v27  ;;  %v97_v33 = vld [vmem:[#allocation8 + $0x50] sm:$0xff]  ;;  %v450_v34 = vpack.c.bf16 %v165_v31, %v163_v29  ;;  %v168_v35 = vld [vmem:[#allocation9 + $0x68] sm:$0xff]  ;;  %v170_v36 = vld [vmem:[#allocation9 + $0x78] sm:$0xff] }
  0x52   :  { %447 = vmatpush1.bf16.msra.mxu1 %v446_v21  ;;  %v100_v37 = vld [vmem:[#allocation8 + $0x68] sm:$0xff]  ;;  %v514_v38 = vpack.c.bf16 %v97_v33, %v95_v32  ;;  %v452_v39 = vpack.c.bf16 %v170_v36, %v168_v35  ;;  %v102_v40 = vld [vmem:[#allocation8 + $0x78] sm:$0xff]  ;;  %v167_v41 = vld [vmem:[#allocation9 + $0x60] sm:$0xff] }
  0x53   :  { %511 = vmatpush1.bf16.msra.mxu0 %v510_v25  ;;  %449 = vmatprep.subr.bf16.mxu1 %v448_v26  ;;  %v169_v42 = vld [vmem:[#allocation9 + $0x70] sm:$0xff]  ;;  %v516_v43 = vpack.c.bf16 %v102_v40, %v100_v37  ;;  %v99_v44 = vld [vmem:[#allocation8 + $0x60] sm:$0xff]  ;;  %v172_v46 = vld [vmem:[#allocation9 + $0x88] sm:$0xff] }
  0x54   :  { %513 = vmatprep.subr.bf16.mxu0 %v512_v30  ;;  %v101_v45 = vld [vmem:[#allocation8 + $0x70] sm:$0xff]  ;;  %v174_v47 = vld [vmem:[#allocation9 + $0x98] sm:$0xff]  ;;  %v104_v48 = vld [vmem:[#allocation8 + $0x88] sm:$0xff]  ;;  %v454_v50 = vpack.c.bf16 %v169_v42, %v167_v41 }
  0x55   :  { %v106_v49 = vld [vmem:[#allocation8 + $0x98] sm:$0xff]  ;;  %v518_v51 = vpack.c.bf16 %v101_v45, %v99_v44  ;;  %v456_v52 = vpack.c.bf16 %v174_v47, %v172_v46  ;;  %v171_v53 = vld [vmem:[#allocation9 + $0x80] sm:$0xff]  ;;  %v173_v54 = vld [vmem:[#allocation9 + $0x90] sm:$0xff] }
  0x56   :  { %451 = vmatpush1.bf16.msra.mxu1 %v450_v34  ;;  %v103_v55 = vld [vmem:[#allocation8 + $0x80] sm:$0xff]  ;;  %v520_v56 = vpack.c.bf16 %v106_v49, %v104_v48  ;;  %v105_v57 = vld [vmem:[#allocation8 + $0x90] sm:$0xff]  ;;  %v176_v58 = vld [vmem:[#allocation9 + $0xa8] sm:$0xff]  ;;  %v458_v62 = vpack.c.bf16 %v173_v54, %v171_v53 }
  0x57   :  { %515 = vmatpush1.bf16.msra.mxu0 %v514_v38  ;;  %453 = vmatprep.subr.bf16.mxu1 %v452_v39  ;;  %v178_v59 = vld [vmem:[#allocation9 + $0xb8] sm:$0xff]  ;;  %v108_v60 = vld [vmem:[#allocation8 + $0xa8] sm:$0xff]  ;;  %v522_v63 = vpack.c.bf16 %v105_v57, %v103_v55  ;;  %v175_v1 = vld [vmem:[#allocation9 + $0xa0] sm:$0xff] }
  0x58   :  { %517 = vmatprep.subr.bf16.mxu0 %v516_v43  ;;  %v110_v61 = vld [vmem:[#allocation8 + $0xb8] sm:$0xff]  ;;  %v460_v0 = vpack.c.bf16 %v178_v59, %v176_v58  ;;  %v177_v2 = vld [vmem:[#allocation9 + $0xb0] sm:$0xff]  ;;  %v107_v3 = vld [vmem:[#allocation8 + $0xa0] sm:$0xff] }
  0x59   :  { %v524_v4 = vpack.c.bf16 %v110_v61, %v108_v60  ;;  %v109_v5 = vld [vmem:[#allocation8 + $0xb0] sm:$0xff]  ;;  %v180_v6 = vld [vmem:[#allocation9 + $0xc8] sm:$0xff]  ;;  %v182_v7 = vld [vmem:[#allocation9 + $0xd8] sm:$0xff]  ;;  %v462_v10 = vpack.c.bf16 %v177_v2, %v175_v1 }
  0x5a   :  { %455 = vmatpush1.bf16.msra.mxu1 %v454_v50  ;;  %v112_v8 = vld [vmem:[#allocation8 + $0xc8] sm:$0xff]  ;;  %v114_v9 = vld [vmem:[#allocation8 + $0xd8] sm:$0xff]  ;;  %v526_v11 = vpack.c.bf16 %v109_v5, %v107_v3  ;;  %v464_v12 = vpack.c.bf16 %v182_v7, %v180_v6  ;;  %v179_v13 = vld [vmem:[#allocation9 + $0xc0] sm:$0xff] }
  0x5b   :  { %519 = vmatpush1.bf16.msra.mxu0 %v518_v51  ;;  %457 = vmatprep.subr.bf16.mxu1 %v456_v52  ;;  %v181_v14 = vld [vmem:[#allocation9 + $0xd0] sm:$0xff]  ;;  %v111_v15 = vld [vmem:[#allocation8 + $0xc0] sm:$0xff]  ;;  %v528_v16 = vpack.c.bf16 %v114_v9, %v112_v8  ;;  %v184_v18 = vld [vmem:[#allocation9 + $0xe8] sm:$0xff] }
  0x5c   :  { %521 = vmatprep.subr.bf16.mxu0 %v520_v56  ;;  %v113_v17 = vld [vmem:[#allocation8 + $0xd0] sm:$0xff]  ;;  %v186_v19 = vld [vmem:[#allocation9 + $0xf8] sm:$0xff]  ;;  %v116_v20 = vld [vmem:[#allocation8 + $0xe8] sm:$0xff]  ;;  %v466_v22 = vpack.c.bf16 %v181_v14, %v179_v13 }
  0x5d   :  { %v118_v21 = vld [vmem:[#allocation8 + $0xf8] sm:$0xff]  ;;  %v530_v23 = vpack.c.bf16 %v113_v17, %v111_v15  ;;  %v468_v24 = vpack.c.bf16 %v186_v19, %v184_v18  ;;  %v183_v25 = vld [vmem:[#allocation9 + $0xe0] sm:$0xff]  ;;  %v185_v26 = vld [vmem:[#allocation9 + $0xf0] sm:$0xff] }
  0x5e   :  { %459 = vmatpush1.bf16.msra.mxu1 %v458_v62  ;;  %v115_v27 = vld [vmem:[#allocation8 + $0xe0] sm:$0xff]  ;;  %v532_v28 = vpack.c.bf16 %v118_v21, %v116_v20  ;;  %v117_v29 = vld [vmem:[#allocation8 + $0xf0] sm:$0xff]  ;;  %v188_v30 = vld [vmem:[#allocation9 + $0x108] sm:$0xff]  ;;  %v470_v34 = vpack.c.bf16 %v185_v26, %v183_v25 }
  0x5f   :  { %523 = vmatpush1.bf16.msra.mxu0 %v522_v63  ;;  %461 = vmatprep.subr.bf16.mxu1 %v460_v0  ;;  %v190_v31 = vld [vmem:[#allocation9 + $0x118] sm:$0xff]  ;;  %v120_v32 = vld [vmem:[#allocation8 + $0x108] sm:$0xff]  ;;  %v534_v35 = vpack.c.bf16 %v117_v29, %v115_v27  ;;  %v187_v37 = vld [vmem:[#allocation9 + $0x100] sm:$0xff] }
  0x60   :  { %525 = vmatprep.subr.bf16.mxu0 %v524_v4  ;;  %v122_v33 = vld [vmem:[#allocation8 + $0x118] sm:$0xff]  ;;  %v472_v36 = vpack.c.bf16 %v190_v31, %v188_v30  ;;  %v189_v38 = vld [vmem:[#allocation9 + $0x110] sm:$0xff]  ;;  %v119_v39 = vld [vmem:[#allocation8 + $0x100] sm:$0xff] }
  0x61   :  { %v536_v40 = vpack.c.bf16 %v122_v33, %v120_v32  ;;  %v121_v41 = vld [vmem:[#allocation8 + $0x110] sm:$0xff]  ;;  %v192_v42 = vld [vmem:[#allocation9 + $0x128] sm:$0xff]  ;;  %v194_v43 = vld [vmem:[#allocation9 + $0x138] sm:$0xff]  ;;  %v474_v46 = vpack.c.bf16 %v189_v38, %v187_v37 }
  0x62   :  { %463 = vmatpush1.bf16.msra.mxu1 %v462_v10  ;;  %v124_v44 = vld [vmem:[#allocation8 + $0x128] sm:$0xff]  ;;  %v126_v45 = vld [vmem:[#allocation8 + $0x138] sm:$0xff]  ;;  %v538_v47 = vpack.c.bf16 %v121_v41, %v119_v39  ;;  %v476_v48 = vpack.c.bf16 %v194_v43, %v192_v42  ;;  %v191_v49 = vld [vmem:[#allocation9 + $0x120] sm:$0xff] }
  0x63   :  { %527 = vmatpush1.bf16.msra.mxu0 %v526_v11  ;;  %465 = vmatprep.subr.bf16.mxu1 %v464_v12  ;;  %v193_v50 = vld [vmem:[#allocation9 + $0x130] sm:$0xff]  ;;  %v123_v51 = vld [vmem:[#allocation8 + $0x120] sm:$0xff]  ;;  %v540_v52 = vpack.c.bf16 %v126_v45, %v124_v44  ;;  %v196_v54 = vld [vmem:[#allocation9 + $0x148] sm:$0xff] }
  0x64   :  { %529 = vmatprep.subr.bf16.mxu0 %v528_v16  ;;  %v125_v53 = vld [vmem:[#allocation8 + $0x130] sm:$0xff]  ;;  %v198_v55 = vld [vmem:[#allocation9 + $0x158] sm:$0xff]  ;;  %v128_v56 = vld [vmem:[#allocation8 + $0x148] sm:$0xff]  ;;  %v478_v58 = vpack.c.bf16 %v193_v50, %v191_v49 }
  0x65   :  { %v130_v57 = vld [vmem:[#allocation8 + $0x158] sm:$0xff]  ;;  %v542_v59 = vpack.c.bf16 %v125_v53, %v123_v51  ;;  %v480_v60 = vpack.c.bf16 %v198_v55, %v196_v54  ;;  %v195_v61 = vld [vmem:[#allocation9 + $0x140] sm:$0xff]  ;;  %v197_v62 = vld [vmem:[#allocation9 + $0x150] sm:$0xff] }
  0x66   :  { %467 = vmatpush1.bf16.msra.mxu1 %v466_v22  ;;  %v127_v63 = vld [vmem:[#allocation8 + $0x140] sm:$0xff]  ;;  %v544_v0 = vpack.c.bf16 %v130_v57, %v128_v56  ;;  %v129_v1 = vld [vmem:[#allocation8 + $0x150] sm:$0xff]  ;;  %v200_v2 = vld [vmem:[#allocation9 + $0x168] sm:$0xff]  ;;  %v482_v6 = vpack.c.bf16 %v197_v62, %v195_v61 }
  0x67   :  { %531 = vmatpush1.bf16.msra.mxu0 %v530_v23  ;;  %469 = vmatprep.subr.bf16.mxu1 %v468_v24  ;;  %v202_v3 = vld [vmem:[#allocation9 + $0x178] sm:$0xff]  ;;  %v132_v4 = vld [vmem:[#allocation8 + $0x168] sm:$0xff]  ;;  %v199_v7 = vld [vmem:[#allocation9 + $0x160] sm:$0xff]  ;;  %v546_v8 = vpack.c.bf16 %v129_v1, %v127_v63 }
  0x68   :  { %533 = vmatprep.subr.bf16.mxu0 %v532_v28  ;;  %v134_v5 = vld [vmem:[#allocation8 + $0x178] sm:$0xff]  ;;  %v484_v9 = vpack.c.bf16 %v202_v3, %v200_v2  ;;  %v201_v10 = vld [vmem:[#allocation9 + $0x170] sm:$0xff]  ;;  %v131_v11 = vld [vmem:[#allocation8 + $0x160] sm:$0xff] }
  0x69   :  { %v133_v12 = vld [vmem:[#allocation8 + $0x170] sm:$0xff]  ;;  %v548_v13 = vpack.c.bf16 %v134_v5, %v132_v4  ;;  %v204_v14 = vld [vmem:[#allocation9 + $0x188] sm:$0xff]  ;;  %v206_v15 = vld [vmem:[#allocation9 + $0x198] sm:$0xff]  ;;  %v486_v20 = vpack.c.bf16 %v201_v10, %v199_v7 }
  0x6a   :  { %471 = vmatpush1.bf16.msra.mxu1 %v470_v34  ;;  %v152_v16 = vld [vmem:[#allocation6 + $0x8] sm:$0xff]  ;;  %v138_v18 = vld [vmem:[#allocation8 + $0x198] sm:$0xff]  ;;  %v550_v21 = vpack.c.bf16 %v133_v12, %v131_v11  ;;  %v488_v22 = vpack.c.bf16 %v206_v15, %v204_v14  ;;  %v203_v23 = vld [vmem:[#allocation9 + $0x180] sm:$0xff] }
  0x6b   :  { %535 = vmatpush1.bf16.msra.mxu0 %v534_v35  ;;  %473 = vmatprep.subr.bf16.mxu1 %v472_v36  ;;  %v136_v17 = vld [vmem:[#allocation8 + $0x188] sm:$0xff]  ;;  %v205_v24 = vld [vmem:[#allocation9 + $0x190] sm:$0xff]  ;;  %v135_v25 = vld [vmem:[#allocation8 + $0x180] sm:$0xff] }
  0x6c   :  { %537 = vmatprep.subr.bf16.mxu0 %v536_v40  ;;  %283 = vmatprep.mubr.f32.mxu1 %v152_v16  ;;  %v84_v19 = vld [vmem:[#allocation3 + $0x8] sm:$0xff]  ;;  %v552_v26 = vpack.c.bf16 %v138_v18, %v136_v17  ;;  %v137_v27 = vld [vmem:[#allocation8 + $0x190] sm:$0xff]  ;;  %v210_v29 = vld [vmem:[#allocation9 + $0x1b8] sm:$0xff]  ;;  %v490_v32 = vpack.c.bf16 %v205_v24, %v203_v23 }
  0x6d   :  { %360 = vmatprep.mubr.f32.mxu0 %v84_v19  ;;  %v208_v28 = vld [vmem:[#allocation9 + $0x1a8] sm:$0xff]  ;;  %v142_v31 = vld [vmem:[#allocation8 + $0x1b8] sm:$0xff]  ;;  %v554_v33 = vpack.c.bf16 %v137_v27, %v135_v25  ;;  %v207_v35 = vld [vmem:[#allocation9 + $0x1a0] sm:$0xff] }
  0x6e   :  { %475 = vmatpush1.bf16.msra.mxu1 %v474_v46  ;;  %v140_v30 = vld [vmem:[#allocation8 + $0x1a8] sm:$0xff]  ;;  %v492_v34 = vpack.c.bf16 %v210_v29, %v208_v28  ;;  %v209_v36 = vld [vmem:[#allocation9 + $0x1b0] sm:$0xff]  ;;  %v139_v37 = vld [vmem:[#allocation8 + $0x1a0] sm:$0xff] }
  0x6f   :  { %539 = vmatpush1.bf16.msra.mxu0 %v538_v47  ;;  %477 = vmatprep.subr.bf16.mxu1 %v476_v48  ;;  %v556_v38 = vpack.c.bf16 %v142_v31, %v140_v30  ;;  %v141_v39 = vld [vmem:[#allocation8 + $0x1b0] sm:$0xff]  ;;  %v212_v40 = vld [vmem:[#allocation9 + $0x1c8] sm:$0xff]  ;;  %v214_v41 = vld [vmem:[#allocation9 + $0x1d8] sm:$0xff]  ;;  %v494_v44 = vpack.c.bf16 %v209_v36, %v207_v35 }
  0x70   :  { %541 = vmatprep.subr.bf16.mxu0 %v540_v52  ;;  %v144_v42 = vld [vmem:[#allocation8 + $0x1c8] sm:$0xff]  ;;  %v146_v43 = vld [vmem:[#allocation8 + $0x1d8] sm:$0xff]  ;;  %v558_v45 = vpack.c.bf16 %v141_v39, %v139_v37  ;;  %v496_v46 = vpack.c.bf16 %v214_v41, %v212_v40  ;;  %v211_v47 = vld [vmem:[#allocation9 + $0x1c0] sm:$0xff] }
  0x71   :  { %v213_v48 = vld [vmem:[#allocation9 + $0x1d0] sm:$0xff]  ;;  %v143_v49 = vld [vmem:[#allocation8 + $0x1c0] sm:$0xff]  ;;  %v560_v50 = vpack.c.bf16 %v146_v43, %v144_v42  ;;  %v216_v52 = vld [vmem:[#allocation9 + $0x1e8] sm:$0xff] }
  0x72   :  { %479 = vmatpush1.bf16.msra.mxu1 %v478_v58  ;;  %v145_v51 = vld [vmem:[#allocation8 + $0x1d0] sm:$0xff]  ;;  %v218_v53 = vld [vmem:[#allocation9 + $0x1f8] sm:$0xff]  ;;  %v148_v54 = vld [vmem:[#allocation8 + $0x1e8] sm:$0xff]  ;;  %v498_v56 = vpack.c.bf16 %v213_v48, %v211_v47 }
  0x73   :  { %543 = vmatpush1.bf16.msra.mxu0 %v542_v59  ;;  %481 = vmatprep.subr.bf16.mxu1 %v480_v60  ;;  %v150_v55 = vld [vmem:[#allocation8 + $0x1f8] sm:$0xff]  ;;  %v562_v57 = vpack.c.bf16 %v145_v51, %v143_v49  ;;  %v500_v58 = vpack.c.bf16 %v218_v53, %v216_v52  ;;  %v215_v59 = vld [vmem:[#allocation9 + $0x1e0] sm:$0xff]  ;;  %v217_v60 = vld [vmem:[#allocation9 + $0x1f0] sm:$0xff] }
  0x74   :  { %545 = vmatprep.subr.bf16.mxu0 %v544_v0  ;;  %v564_v61 = vpack.c.bf16 %v150_v55, %v148_v54  ;;  %v147_v62 = vld [vmem:[#allocation8 + $0x1e0] sm:$0xff]  ;;  %v149_v63 = vld [vmem:[#allocation8 + $0x1f0] sm:$0xff]  ;;  %v502_v0 = vpack.c.bf16 %v217_v60, %v215_v59  ;;  %v154_v4 = vld [vmem:[#allocation6 + $0x18] sm:$0xff] }
  0x75   :  { %v566_v1 = vpack.c.bf16 %v149_v63, %v147_v62  ;;  %v151_v2 = vld [vmem:[#allocation6] sm:$0xff]  ;;  %v86_v5 = vld [vmem:[#allocation3 + $0x18] sm:$0xff]  ;;  %v85_v7 = vld [vmem:[#allocation3 + $0x10] sm:$0xff] }
  0x76   :  { %483 = vmatpush1.bf16.msra.mxu1 %v482_v6  ;;  %v83_v3 = vld [vmem:[#allocation3] sm:$0xff]  ;;  %v153_v6 = vld [vmem:[#allocation6 + $0x10] sm:$0xff] }
  0x77   :  { %547 = vmatpush1.bf16.msra.mxu0 %v546_v8  ;;  %485 = vmatprep.subr.bf16.mxu1 %v484_v9  ;;  %v375_v8 = vlaneseq  ;;  %v373_v11 = vld [vmem:[%s847_s4] sm:$0x3] }
  0x78   :  { %549 = vmatprep.subr.bf16.mxu0 %v548_v13  ;;  %v393_v18 = vld [vmem:[%s848_s5] sm:$0x3] }
  0x79   :  { %v376_v9 = vshrl.u32 %v375_v8, 7 }
  0x7a   :  { %487 = vmatpush1.bf16.msra.mxu1 %v486_v20 }
  0x7b   :  { %551 = vmatpush1.bf16.msra.mxu0 %v550_v21  ;;  %489 = vmatprep.subr.bf16.mxu1 %v488_v22  ;;  %v377_v10 = vsub.s32 0, %v376_v9  ;;  %v381_v12 = vsub.s32 1, %v376_v9 }
  0x7c   :  { %553 = vmatprep.subr.bf16.mxu0 %v552_v26 }
  0x7d   :  { %v378_v14 = vrot.slane %v373_v11, %v377_v10  ;;  %v382_v17 = vrot.slane %v373_v11, %v381_v12  ;;  %v398_v24 = vrot.slane %v393_v18, %v377_v10  ;;  %v402_v28 = vrot.slane %v393_v18, %v381_v12 }
  0x7e   :  { %491 = vmatpush1.bf16.msra.mxu1 %v490_v32 }
  0x7f   :  { %555 = vmatpush1.bf16.msra.mxu0 %v554_v33  ;;  %493 = vmatprep.subr.bf16.mxu1 %v492_v34 }
  0x80   :  { %557 = vmatprep.subr.bf16.mxu0 %v556_v38 }
  0x82   :  { %495 = vmatpush1.bf16.msra.mxu1 %v494_v44  ;;  %v416_v44 = vstv %s849_s6 }
  0x83   :  { %559 = vmatpush1.bf16.msra.mxu0 %v558_v45  ;;  %497 = vmatprep.subr.bf16.mxu1 %v496_v46 }
  0x84   :  { %561 = vmatprep.subr.bf16.mxu0 %v560_v50 }
  0x86   :  { %499 = vmatpush1.bf16.msra.mxu1 %v498_v56 }
  0x87   :  { %563 = vmatpush1.bf16.msra.mxu0 %v562_v57  ;;  %501 = vmatprep.subr.bf16.mxu1 %v500_v58 }
  0x88   :  { %565 = vmatprep.subr.bf16.mxu0 %v564_v61 }
  0x8a   :  { %503 = vmatpush1.bf16.msra.mxu1 %v502_v0 }
  0x8b   :  { %567 = vmatpush1.bf16.msra.mxu0 %v566_v1 }
  0x8d   :  { %284 = vmatmul.mubr.f32.vlgmr.msra.gmra.mrb[0].mxu1 %v151_v2 }
  0x8e   :  { %361 = vmatmul.mubr.f32.vlgmr.msra.gmra.mrb[0].mxu0 %v83_v3  ;;  %289 = vmatprep.mubr.f32.mxu1 %v154_v4 }
  0x8f   :  { %366 = vmatprep.mubr.f32.mxu0 %v86_v5 }
  0x91   :  { %290 = vmatmul.mubr.f32.gmra.mrb[2].mxu1 %v153_v6 }
  0x92   :  { %367 = vmatmul.mubr.f32.gmra.mrb[2].mxu0 %v85_v7 }
 0x160   :  { %v285_v13 = vpop.f32.mrb[0].mxu1 }
 0x161   :  { %v362_v15 = vpop.f32.mrb[0].mxu0  ;;  %v287_v16 = vpop.f32.mrb[1].mxu1 }
 0x162   :  { %v363_v19 = vadd.f32 %v362_v15, %v285_v13  ;;  %v364_v20 = vpop.f32.mrb[1].mxu0 }
 0x163   :  { %v365_v21 = vadd.f32 %v364_v20, %v287_v16 }
 0x164   :  { %v385_v22 = vadd.f32 %v378_v14, %v363_v19  ;;  %v291_v23 = vpop.f32.mrb[2].mxu1 }
 0x165   :  { %v386_v25 = vadd.f32 %v382_v17, %v365_v21  ;;  %v368_v26 = vpop.f32.mrb[2].mxu0  ;;  %v293_v27 = vpop.f32.mrb[3].mxu1 }
 0x166   :  { %v389_v29 = vmax.f32 %v385_v22, 0.0  ;;  %v369_v30 = vadd.f32 %v368_v26, %v291_v23  ;;  %v370_v31 = vpop.f32.mrb[3].mxu0 }
 0x167   :  { %v390_v32 = vmax.f32 %v386_v25, 0.0  ;;  %v371_v33 = vadd.f32 %v370_v31, %v293_v27 }
 0x168   :  { %v387_v34 = vadd.f32 %v378_v14, %v369_v30  ;;  %v405_v35 = vmul.f32 %v398_v24, %v389_v29 }
 0x169   :  { %v388_v36 = vadd.f32 %v382_v17, %v371_v33  ;;  %v406_v37 = vmul.f32 %v402_v28, %v390_v32 }
 0x16a   :  { %v391_v38 = vmax.f32 %v387_v34, 0.0 }
 0x16b   :  { %v392_v39 = vmax.f32 %v388_v36, 0.0  ;;  %v409_v40 = vadd.f32 %v406_v37, %v405_v35 }
 0x16c   :  { %v407_v41 = vmul.f32 %v398_v24, %v391_v38 }
 0x16d   :  { %410 = vadd.xlane.f32.xlu0 %v409_v40  ;;  %v408_v42 = vmul.f32 %v402_v28, %v392_v39 }
 0x16f   :  { %v412_v43 = vadd.f32 %v408_v42, %v407_v41 }
 0x171   :  { %413 = vadd.xlane.f32.xlu0 %v412_v43 }
 0x1fa   :  { %v411_v45 = vpop.xlane.xlu0 %410 }
 0x1fb   :  { %v417_v46 = vadd.f32 %v416_v44, %v411_v45 }
 0x1fd   :  { %419 = vst [vmem:[#allocation11] sm:$0xff] %v417_v46 }
 0x1fe   :  { %v414_v47 = vpop.xlane.xlu0 %413 }
 0x1ff   :  { %v418_v48 = vadd.f32 %v416_v44, %v414_v47 }
 0x201   :  { %420 = vst [vmem:[#allocation11 + $0x8] sm:$0xff] %v418_v48 }
 0x202   :  { %680 = shalt.err (!%p677_p8)
}
 0x203   :  { %s681_s6 = scalar_lea.hbm %s850_s7, 256 }
 0x204   :  { %p682_p9 = scmp.ne.s32.totalorder %s850_s7, %s681_s6  ;;  %p685_p10 = scmp.lt.u32.totalorder %s681_s6, %s850_s7 }
 0x206   :  { %p687_p11 = pnand %p685_p10, %p682_p9 }
 0x208   :  { %690 = shalt.err (!%p687_p11)
}
 0x209   :  { %s706_s16 = smov 128   ;;  %s707_s0 = smov 8  }
 0x20a   :  { %432 = dma.vmem_to_hbm [thread:$0]  %s427_s29, 256, %s850_s7, [#allocation5], %s706_s16, %s706_s16, %s707_s0  }
 0x20b   :  { %697 = dma.done.wait [#allocation5], 256  }
 0x20c   :  { %698 = vsyncadd [#allocation5], 4294967040 }
 0x20d   :  { %436 = vsyncpa [#allocation4], 1 }
 0x20e   :  { %437 = vsyncpa [#allocation7], 1 }
 0x20f   :  { %438 = vsyncpa [#allocation10], 1 }
 0x210   :  { %439 = vsyncpa [#allocation5], 1 }

</bundles_post_ra>
